<compile_context>
chip_gen: v6e
topology: v6e:2x2x1
jax: 0.10.0
libtpu: 0.0.40
codegen_flags: <defaults>
</compile_context>

<pallas_src>
import jax
import jax.numpy as jnp
from jax.experimental import pallas as pl
from jax.experimental.pallas import tpu as pltpu


def _round_up(x, m):
    return ((x + m - 1) // m) * m


# ------------------------------- kernel --------------------------------------

def twopath_kernel(x_ref, w1_ref, b1_ref, w2_ref, b2_ref,
                   w3a_ref, w3b_ref, b3_ref, w4_ref, b4_ref,
                   out_ref):
    tb = x_ref.shape[1]
    F = x_ref.shape[2]
    E = w2_ref.shape[1]

    # Both paths were stacked along the batch (M) axis in the wrapper -> a
    # single fused MXU pass through w1/w2.  (2, tb, F) -> (2*tb, F) is free
    # (tb % 8 == 0).  Activations arrive f32; cast to bf16 here (VPU filler
    # hidden under the matmuls), accumulate in f32.
    x = x_ref[...].reshape(2 * tb, F).astype(jnp.bfloat16)

    h = jnp.dot(x, w1_ref[...], preferred_element_type=jnp.float32)
    h = jnp.maximum(h + b1_ref[...], 0.0).astype(jnp.bfloat16)
    z = jnp.dot(h, w2_ref[...], preferred_element_type=jnp.float32) + b2_ref[...]

    # Classifier on cat(z1, z2), expressed as two half-K dots with w3 split in
    # the wrapper (w3a = w3[:E], w3b = w3[E:]).  No in-kernel lane concat, and
    # it stays layout-friendly for any E; the f32 add rides the VPU for free.
    zr = z.reshape(2, tb, E)
    z1 = zr[0].astype(jnp.bfloat16)
    z2 = zr[1].astype(jnp.bfloat16)
    c = (jnp.dot(z1, w3a_ref[...], preferred_element_type=jnp.float32)
         + jnp.dot(z2, w3b_ref[...], preferred_element_type=jnp.float32))
    c = jnp.maximum(c + b3_ref[...], 0.0).astype(jnp.bfloat16)
    y = jnp.dot(c, w4_ref[...], preferred_element_type=jnp.float32) + b4_ref[...]

    # NOTE: out_size may be tiny (1) -> masked partial store; negligible here.
    out_ref[...] = y.astype(out_ref.dtype)


# ------------------------------- wrapper --------------------------------------

def two_path_forward(inp1, inp2, kparams, *, max_tile_b=512):
    """inp1, inp2: (B, C, H, W) float32. kparams from prepare_params().
    Returns (B, output_size) float32."""
    w1, b1 = kparams["w1"], kparams["b1"]
    w2, b2 = kparams["w2"], kparams["b2"]
    w3a, w3b, b3 = kparams["w3a"], kparams["w3b"], kparams["b3"]
    w4, b4 = kparams["w4"], kparams["b4"]

    B = inp1.shape[0]
    F, I = w1.shape
    E = w2.shape[1]
    O = w4.shape[1]

    # flatten (== torch.flatten(x, start_dim=1)); keep f32, cast in-kernel.
    x1 = inp1.reshape(B, -1)
    x2 = inp2.reshape(B, -1)
    assert x1.shape[1] == F and x2.shape[1] == F

    # ---- generation-aware VMEM budget & batch tiling -------------------------
    try:
        vmem_cap = int(pltpu.get_tpu_info().vmem_capacity_bytes)
    except Exception:
        vmem_cap = 128 * 1024 * 1024          # v5e/v6e-like fallback
    budget_cap = int(0.8 * vmem_cap)
    # v7x-like chip (~64 MiB VMEM/TC, 2 TCs): make sure the "parallel" batch
    # axis has >= 2 grid steps so both TensorCores get work even for small B.
    min_tiles = 2 if vmem_cap <= 80 * 1024 * 1024 else 1

    def est_bytes(tb):
        weight_bytes = 2 * (F * I + I * E + 2 * E * E + E * O)          # bf16, resident
        bias_bytes = 4 * 8 * (_round_up(I, 128) + 2 * _round_up(E, 128)
                              + _round_up(O, 128))
        act_bytes = 2 * (2 * tb * F * 4)                                # f32, dbl-buffered
        out_bytes = 2 * tb * max(O, 128) * 4
        return weight_bytes + bias_bytes + act_bytes + out_bytes + (2 << 20)

    num_tiles = max(pl.cdiv(B, max_tile_b), min_tiles)
    tile_b = _round_up(pl.cdiv(B, num_tiles), 16)   # 16-aligned: bf16 sublane packing
    while est_bytes(tile_b) > budget_cap and tile_b > 16:
        tile_b = max(16, _round_up(tile_b // 2, 16))
    # TODO(synk): if resident weights alone exceed the budget (very large F*I on
    # v7x's 64 MiB VMEM), add a K-tiling grid axis over F ("arbitrary", f32
    # accumulator scratch) instead of keeping w1 fully resident.
    num_tiles = max(pl.cdiv(B, tile_b), min_tiles)
    Bp = num_tiles * tile_b
    vmem_limit = int(min(max(2 * est_bytes(tile_b), 32 * 1024 * 1024), budget_cap))

    # Stack the two paths along a leading axis (single XLA pass), pad the batch.
    x = jnp.stack([x1, x2], axis=0)                 # (2, B, F) f32
    if Bp != B:
        x = jnp.pad(x, ((0, 0), (0, Bp - B), (0, 0)))

    # ---- cost hint for the XLA scheduler -------------------------------------
    flops = 2 * (2 * Bp * F * I + 2 * Bp * I * E + Bp * (2 * E) * E + Bp * E * O)
    bytes_accessed = (2 * Bp * F) * 4 \
        + (w1.size + w2.size + w3a.size + w3b.size + w4.size) * 2 \
        + (b1.size + b2.size + b3.size + b4.size) * 4 \
        + Bp * O * 4
    cost = pl.CostEstimate(flops=int(flops), transcendentals=0,
                           bytes_accessed=int(bytes_accessed))

    fn = pl.pallas_call(
        twopath_kernel,
        out_shape=jax.ShapeDtypeStruct((Bp, O), jnp.float32),
        grid=(num_tiles,),
        in_specs=[
            # stacked activations, batch-tiled and pipelined (HBM->VMEM dbl-buf).
            # If profiling shows exposed DMA for very large F, bump to
            # pipeline_mode=pl.Buffered(3).
            pl.BlockSpec((2, tile_b, F), lambda i: (0, i, 0)),
            pl.BlockSpec((F, I), lambda i: (0, 0)),        # w1 (VMEM-resident)
            pl.BlockSpec((1, I), lambda i: (0, 0)),        # b1
            pl.BlockSpec((I, E), lambda i: (0, 0)),        # w2
            pl.BlockSpec((1, E), lambda i: (0, 0)),        # b2
            pl.BlockSpec((E, E), lambda i: (0, 0)),        # w3[:E]
            pl.BlockSpec((E, E), lambda i: (0, 0)),        # w3[E:]
            pl.BlockSpec((1, E), lambda i: (0, 0)),        # b3
            pl.BlockSpec((E, O), lambda i: (0, 0)),        # w4
            pl.BlockSpec((1, O), lambda i: (0, 0)),        # b4
        ],
        out_specs=pl.BlockSpec((tile_b, O), lambda i: (i, 0)),
        compiler_params=pltpu.CompilerParams(
            dimension_semantics=("parallel",),
            vmem_limit_bytes=vmem_limit,
        ),
        cost_estimate=cost,
    )
    y = fn(x, w1, b1, w2, b2, w3a, w3b, b3, w4, b4)
    return y[:B] if Bp != B else y


# --------------------------- params / reference -------------------------------

def init_params(key, input_size, intermediate_size, embedding_size, output_size):
    """Deterministic synthetic init; f32 weights stored as [in, out]."""
    ks = jax.random.split(key, 8)

    def lin(kw, kb, fan_in, fan_out):
        bound = 1.0 / jnp.sqrt(fan_in)
        w = jax.random.uniform(kw, (fan_in, fan_out), jnp.float32, -bound, bound)
        b = jax.random.uniform(kb, (1, fan_out), jnp.float32, -bound, bound)
        return w, b

    w1, b1 = lin(ks[0], ks[1], input_size, intermediate_size)
    w2, b2 = lin(ks[2], ks[3], intermediate_size, embedding_size)
    w3, b3 = lin(ks[4], ks[5], 2 * embedding_size, embedding_size)
    w4, b4 = lin(ks[6], ks[7], embedding_size, output_size)
    return (w1, b1, w2, b2, w3, b3, w4, b4)


def prepare_params(params):
    """One-time, call-path-free prep: bf16 weights for the MXU, f32 biases,
    and w3 pre-split into its two E x E halves."""
    (w1, b1, w2, b2, w3, b3, w4, b4) = params
    E = w2.shape[1]
    return dict(
        w1=w1.astype(jnp.bfloat16), b1=b1.astype(jnp.float32),
        w2=w2.astype(jnp.bfloat16), b2=b2.astype(jnp.float32),
        w3a=w3[:E].astype(jnp.bfloat16), w3b=w3[E:].astype(jnp.bfloat16),
        b3=b3.astype(jnp.float32),
        w4=w4.astype(jnp.bfloat16), b4=b4.astype(jnp.float32),
    )


def reference_forward(inp1, inp2, params):
    """Pure-JAX f32 reference of the PyTorch forward."""
    (w1, b1, w2, b2, w3, b3, w4, b4) = params
    B = inp1.shape[0]

    def encode(x):
        x = x.reshape(B, -1)
        h = jnp.maximum(x @ w1 + b1, 0.0)
        return h @ w2 + b2

    z1, z2 = encode(inp1), encode(inp2)
    c = jnp.concatenate([z1, z2], axis=1)
    h = jnp.maximum(c @ w3 + b3, 0.0)
    return h @ w4 + b4


if __name__ == "__main__":
    # Small shapes consistent with the module's forward:
    # inp1/inp2: (batch=2, C=4, H=4, W=4) -> flattened input_size = 64
    B, C, H, W = 2, 4, 4, 4
    input_size = C * H * W
    intermediate_size = 256
    embedding_size = 128
    output_size = 1

    key = jax.random.PRNGKey(0)
    k1, k2, kp = jax.random.split(key, 3)
    inp1 = jax.random.normal(k1, (B, C, H, W), jnp.float32)
    inp2 = jax.random.normal(k2, (B, C, H, W), jnp.float32)
    params = init_params(kp, input_size, intermediate_size, embedding_size, output_size)
    kparams = prepare_params(params)     # bf16 weights, split w3 — done once

    y = two_path_forward(inp1, inp2, kparams)
    y = jax.block_until_ready(y)

    y_ref = reference_forward(inp1, inp2, params)
    assert y.shape == (B, output_size)
    # bf16 MXU inputs with f32 accumulation -> compare to the f32 reference
    # with a slightly loosened tolerance.
    assert jnp.allclose(y, y_ref, atol=3e-2, rtol=3e-2), \
        f"max abs err = {float(jnp.max(jnp.abs(y - y_ref)))}"

    print("KERNEL_OK")
</pallas_src>

<mosaic_0001>
module attributes {stable_mosaic.version = 11 : i64} {
  func.func @twopath_kernel(%arg0: i32, %arg1: memref<2x16x64xf32, #tpu.memory_space<vmem>>, %arg2: memref<64x256xbf16, #tpu.memory_space<vmem>>, %arg3: memref<1x256xf32, #tpu.memory_space<vmem>>, %arg4: memref<256x128xbf16, #tpu.memory_space<vmem>>, %arg5: memref<1x128xf32, #tpu.memory_space<vmem>>, %arg6: memref<128x128xbf16, #tpu.memory_space<vmem>>, %arg7: memref<128x128xbf16, #tpu.memory_space<vmem>>, %arg8: memref<1x128xf32, #tpu.memory_space<vmem>>, %arg9: memref<128x1xbf16, #tpu.memory_space<vmem>>, %arg10: memref<1x1xf32, #tpu.memory_space<vmem>>, %arg11: memref<16x1xf32, #tpu.memory_space<vmem>>) attributes {dimension_semantics = [#tpu.dimension_semantics<parallel>], iteration_bounds = array<i64: 1>, scalar_prefetch = 0 : i64, scratch_operands = 0 : i64, tpu.core_type = #tpu.core_type<tc>, window_params = [{transform_indices = @transform_0, window_bounds = array<i64: 2, 16, 64>}, {pipeline_mode = #tpu.pipeline_mode<synchronous>, transform_indices = @transform_1, window_bounds = array<i64: 64, 256>}, {pipeline_mode = #tpu.pipeline_mode<synchronous>, transform_indices = @transform_2, window_bounds = array<i64: 1, 256>}, {pipeline_mode = #tpu.pipeline_mode<synchronous>, transform_indices = @transform_3, window_bounds = array<i64: 256, 128>}, {pipeline_mode = #tpu.pipeline_mode<synchronous>, transform_indices = @transform_4, window_bounds = array<i64: 1, 128>}, {pipeline_mode = #tpu.pipeline_mode<synchronous>, transform_indices = @transform_5, window_bounds = array<i64: 128, 128>}, {pipeline_mode = #tpu.pipeline_mode<synchronous>, transform_indices = @transform_6, window_bounds = array<i64: 128, 128>}, {pipeline_mode = #tpu.pipeline_mode<synchronous>, transform_indices = @transform_7, window_bounds = array<i64: 1, 128>}, {pipeline_mode = #tpu.pipeline_mode<synchronous>, transform_indices = @transform_8, window_bounds = array<i64: 128, 1>}, {pipeline_mode = #tpu.pipeline_mode<synchronous>, transform_indices = @transform_9, window_bounds = array<i64: 1, 1>}, {transform_indices = @transform_10, window_bounds = array<i64: 16, 1>}]} {
    %c0 = arith.constant 0 : index
    %c0_0 = arith.constant 0 : index
    %c0_1 = arith.constant 0 : index
    %0 = vector.load %arg1[%c0, %c0_0, %c0_1] : memref<2x16x64xf32, #tpu.memory_space<vmem>>, vector<2x16x64xf32>
    %1 = vector.shape_cast %0 : vector<2x16x64xf32> to vector<32x64xf32>
    %2 = arith.truncf %1 : vector<32x64xf32> to vector<32x64xbf16>
    %c0_2 = arith.constant 0 : index
    %c0_3 = arith.constant 0 : index
    %3 = vector.load %arg2[%c0_2, %c0_3] : memref<64x256xbf16, #tpu.memory_space<vmem>>, vector<64x256xbf16>
    %cst = arith.constant dense<0.000000e+00> : vector<32x256xf32>
    %4 = tpu.matmul %2, %3, %cst {dimension_numbers = #tpu.dot_dimension_numbers<[1], [0], [0], [1], [0, 0, 1, 1], [], []>} : vector<32x64xbf16>, vector<64x256xbf16>, vector<32x256xf32> -> vector<32x256xf32>
    %c0_4 = arith.constant 0 : index
    %c0_5 = arith.constant 0 : index
    %5 = vector.load %arg3[%c0_4, %c0_5] : memref<1x256xf32, #tpu.memory_space<vmem>>, vector<1x256xf32>
    %6 = vector.broadcast %5 : vector<1x256xf32> to vector<32x256xf32>
    %7 = arith.addf %4, %6 : vector<32x256xf32>
    %cst_6 = arith.constant 0.000000e+00 : f32
    %8 = vector.broadcast %cst_6 : f32 to vector<32x256xf32>
    %9 = arith.maximumf %7, %8 : vector<32x256xf32>
    %10 = arith.truncf %9 : vector<32x256xf32> to vector<32x256xbf16>
    %c0_7 = arith.constant 0 : index
    %c0_8 = arith.constant 0 : index
    %11 = vector.load %arg4[%c0_7, %c0_8] : memref<256x128xbf16, #tpu.memory_space<vmem>>, vector<256x128xbf16>
    %cst_9 = arith.constant dense<0.000000e+00> : vector<32x128xf32>
    %12 = tpu.matmul %10, %11, %cst_9 {dimension_numbers = #tpu.dot_dimension_numbers<[1], [0], [0], [1], [0, 0, 1, 1], [], []>} : vector<32x256xbf16>, vector<256x128xbf16>, vector<32x128xf32> -> vector<32x128xf32>
    %c0_10 = arith.constant 0 : index
    %c0_11 = arith.constant 0 : index
    %13 = vector.load %arg5[%c0_10, %c0_11] : memref<1x128xf32, #tpu.memory_space<vmem>>, vector<1x128xf32>
    %14 = vector.broadcast %13 : vector<1x128xf32> to vector<32x128xf32>
    %15 = arith.addf %12, %14 : vector<32x128xf32>
    %16 = vector.shape_cast %15 : vector<32x128xf32> to vector<2x16x128xf32>
    %17 = vector.extract_strided_slice %16 {offsets = [0, 0, 0], sizes = [1, 16, 128], strides = [1, 1, 1]} : vector<2x16x128xf32> to vector<1x16x128xf32>
    %18 = vector.shape_cast %17 : vector<1x16x128xf32> to vector<16x128xf32>
    %19 = arith.truncf %18 : vector<16x128xf32> to vector<16x128xbf16>
    %20 = vector.extract_strided_slice %16 {offsets = [1, 0, 0], sizes = [1, 16, 128], strides = [1, 1, 1]} : vector<2x16x128xf32> to vector<1x16x128xf32>
    %21 = vector.shape_cast %20 : vector<1x16x128xf32> to vector<16x128xf32>
    %22 = arith.truncf %21 : vector<16x128xf32> to vector<16x128xbf16>
    %c0_12 = arith.constant 0 : index
    %c0_13 = arith.constant 0 : index
    %23 = vector.load %arg6[%c0_12, %c0_13] : memref<128x128xbf16, #tpu.memory_space<vmem>>, vector<128x128xbf16>
    %cst_14 = arith.constant dense<0.000000e+00> : vector<16x128xf32>
    %24 = tpu.matmul %19, %23, %cst_14 {dimension_numbers = #tpu.dot_dimension_numbers<[1], [0], [0], [1], [0, 0, 1, 1], [], []>} : vector<16x128xbf16>, vector<128x128xbf16>, vector<16x128xf32> -> vector<16x128xf32>
    %c0_15 = arith.constant 0 : index
    %c0_16 = arith.constant 0 : index
    %25 = vector.load %arg7[%c0_15, %c0_16] : memref<128x128xbf16, #tpu.memory_space<vmem>>, vector<128x128xbf16>
    %cst_17 = arith.constant dense<0.000000e+00> : vector<16x128xf32>
    %26 = tpu.matmul %22, %25, %cst_17 {dimension_numbers = #tpu.dot_dimension_numbers<[1], [0], [0], [1], [0, 0, 1, 1], [], []>} : vector<16x128xbf16>, vector<128x128xbf16>, vector<16x128xf32> -> vector<16x128xf32>
    %27 = arith.addf %24, %26 : vector<16x128xf32>
    %c0_18 = arith.constant 0 : index
    %c0_19 = arith.constant 0 : index
    %28 = vector.load %arg8[%c0_18, %c0_19] : memref<1x128xf32, #tpu.memory_space<vmem>>, vector<1x128xf32>
    %29 = vector.broadcast %28 : vector<1x128xf32> to vector<16x128xf32>
    %30 = arith.addf %27, %29 : vector<16x128xf32>
    %cst_20 = arith.constant 0.000000e+00 : f32
    %31 = vector.broadcast %cst_20 : f32 to vector<16x128xf32>
    %32 = arith.maximumf %30, %31 : vector<16x128xf32>
    %33 = arith.truncf %32 : vector<16x128xf32> to vector<16x128xbf16>
    %c0_21 = arith.constant 0 : index
    %c0_22 = arith.constant 0 : index
    %34 = vector.load %arg9[%c0_21, %c0_22] : memref<128x1xbf16, #tpu.memory_space<vmem>>, vector<128x1xbf16>
    %cst_23 = arith.constant dense<0.000000e+00> : vector<16x1xf32>
    %35 = tpu.matmul %33, %34, %cst_23 {dimension_numbers = #tpu.dot_dimension_numbers<[1], [0], [0], [1], [0, 0, 1, 1], [], []>} : vector<16x128xbf16>, vector<128x1xbf16>, vector<16x1xf32> -> vector<16x1xf32>
    %c0_24 = arith.constant 0 : index
    %c0_25 = arith.constant 0 : index
    %36 = vector.load %arg10[%c0_24, %c0_25] : memref<1x1xf32, #tpu.memory_space<vmem>>, vector<1x1xf32>
    %37 = vector.broadcast %36 : vector<1x1xf32> to vector<16x1xf32>
    %38 = arith.addf %35, %37 : vector<16x1xf32>
    %c0_26 = arith.constant 0 : index
    %c0_27 = arith.constant 0 : index
    %39 = vector.load %arg11[%c0_26, %c0_27] : memref<16x1xf32, #tpu.memory_space<vmem>>, vector<16x1xf32>
    tpu.vector_store %arg11[%c0_26, %c0_27], %38 {strides = array<i32>} : memref<16x1xf32, #tpu.memory_space<vmem>>, vector<16x1xf32>,
    return
  }
  func.func @transform_0(%arg0: i32) -> (i32, i32, i32) {
    %c0_i32 = arith.constant 0 : i32
    %c0_i32_0 = arith.constant 0 : i32
    %c0_i32_1 = arith.constant 0 : i32
    return %c0_i32, %arg0, %c0_i32_0 : i32, i32, i32
  }
  func.func @transform_1(%arg0: i32) -> (i32, i32) {
    %c0_i32 = arith.constant 0 : i32
    %c0_i32_0 = arith.constant 0 : i32
    %c0_i32_1 = arith.constant 0 : i32
    return %c0_i32, %c0_i32_0 : i32, i32
  }
  func.func @transform_2(%arg0: i32) -> (i32, i32) {
    %c0_i32 = arith.constant 0 : i32
    %c0_i32_0 = arith.constant 0 : i32
    %c0_i32_1 = arith.constant 0 : i32
    return %c0_i32, %c0_i32_0 : i32, i32
  }
  func.func @transform_3(%arg0: i32) -> (i32, i32) {
    %c0_i32 = arith.constant 0 : i32
    %c0_i32_0 = arith.constant 0 : i32
    %c0_i32_1 = arith.constant 0 : i32
    return %c0_i32, %c0_i32_0 : i32, i32
  }
  func.func @transform_4(%arg0: i32) -> (i32, i32) {
    %c0_i32 = arith.constant 0 : i32
    %c0_i32_0 = arith.constant 0 : i32
    %c0_i32_1 = arith.constant 0 : i32
    return %c0_i32, %c0_i32_0 : i32, i32
  }
  func.func @transform_5(%arg0: i32) -> (i32, i32) {
    %c0_i32 = arith.constant 0 : i32
    %c0_i32_0 = arith.constant 0 : i32
    %c0_i32_1 = arith.constant 0 : i32
    return %c0_i32, %c0_i32_0 : i32, i32
  }
  func.func @transform_6(%arg0: i32) -> (i32, i32) {
    %c0_i32 = arith.constant 0 : i32
    %c0_i32_0 = arith.constant 0 : i32
    %c0_i32_1 = arith.constant 0 : i32
    return %c0_i32, %c0_i32_0 : i32, i32
  }
  func.func @transform_7(%arg0: i32) -> (i32, i32) {
    %c0_i32 = arith.constant 0 : i32
    %c0_i32_0 = arith.constant 0 : i32
    %c0_i32_1 = arith.constant 0 : i32
    return %c0_i32, %c0_i32_0 : i32, i32
  }
  func.func @transform_8(%arg0: i32) -> (i32, i32) {
    %c0_i32 = arith.constant 0 : i32
    %c0_i32_0 = arith.constant 0 : i32
    %c0_i32_1 = arith.constant 0 : i32
    return %c0_i32, %c0_i32_0 : i32, i32
  }
  func.func @transform_9(%arg0: i32) -> (i32, i32) {
    %c0_i32 = arith.constant 0 : i32
    %c0_i32_0 = arith.constant 0 : i32
    %c0_i32_1 = arith.constant 0 : i32
    return %c0_i32, %c0_i32_0 : i32, i32
  }
  func.func @transform_10(%arg0: i32) -> (i32, i32) {
    %c0_i32 = arith.constant 0 : i32
    %c0_i32_0 = arith.constant 0 : i32
    return %arg0, %c0_i32 : i32, i32
  }
}

</mosaic_0001>

<bundles_post_ra>
// kernel: tpu_custom_call.1
= control target key start
LH: loop header
LB: loop body
LE: loop exit
PB: predicated region body
PF: predicated region fallthrough
CT: control target
= control target key end

     0   :  { %s1261_s0 = inlined_call_operand.hbm [shape: f32[2,16,64], index: 0, kind: input, shape index: {}]   ;;  %s1262_s1 = inlined_call_operand.vmem [shape: bf16[64,256], index: 1, kind: input, shape index: {}]   ;;  %s1263_s2 = inlined_call_operand.vmem [shape: f32[1,256], index: 2, kind: input, shape index: {}]   ;;  %s1264_s3 = inlined_call_operand.hbm [shape: bf16[256,128], index: 3, kind: input, shape index: {}]   ;;  %s1265_s4 = inlined_call_operand.vmem [shape: f32[1,128], index: 4, kind: input, shape index: {}]   ;;  %s1266_s5 = inlined_call_operand.hbm [shape: bf16[128,128], index: 5, kind: input, shape index: {}]   ;;  %s1267_s6 = inlined_call_operand.hbm [shape: bf16[128,128], index: 6, kind: input, shape index: {}]   ;;  %s1268_s7 = inlined_call_operand.vmem [shape: f32[1,128], index: 7, kind: input, shape index: {}]   ;;  %s1269_s8 = inlined_call_operand.vmem [shape: bf16[128,1], index: 8, kind: input, shape index: {}]   ;;  %s1270_s9 = inlined_call_operand.<no memory space> [shape: f32[1,1], index: 9, kind: input, shape index: {}]   ;;  %s1271_s10 = inlined_call_operand.vmem [shape: f32[16,1], index: 10, kind: output, shape index: {}]  }
   0x1   :  { %v15_v0 = vstv %s1270_s9 }
   0x2   :  { %16 = vst [vmem:[#allocation2] sm:$0x1] %v15_v0 }
   0x3   :  { %17 = vsyncpa [#allocation4], 0 }
   0x4   :  { %18 = vsyncpa [#allocation6], 0 }
   0x5   :  { %19 = vsyncpa [#allocation9], 0  ;;  %s1078_s15 = smov [#allocation5]  }
   0x6   :  { %s41_s16 = sshll.u32 %s1078_s15, 4  ;;  %s42_s16 = int_to_ptr.vmem [resolvable:$true] %s41_s16 }
   0x7   :  { %s1000_s17 = scalar_lea.vmem %s42_s16, 2048  ;;  %p1005_p1 = scmp.lt.s32.totalorder %s42_s16, %s42_s16 }
   0x8   :  { %p1001_p0 = scmp.ne.s32.totalorder %s42_s16, %s1000_s17  ;;  %p1006_p2 = scmp.lt.s32.totalorder %s1000_s17, %s1000_s17 }
   0xa   :  { %p1007_p3 = por %p1006_p2, %p1005_p1 }
   0xc   :  { %p1008_p4 = pnand %p1007_p3, %p1001_p0 }
   0xe   :  { %1011 = shalt.err (!%p1008_p4)
}
   0xf   :  { %s1079_s18 = smov 64   ;;  %s1080_s19 = smov 4  }
  0x10   :  { %47 = dma.hbm_to_vmem [thread:$0]  %s1264_s3, 2048, %s42_s16, [#allocation6], %s1079_s18, %s1079_s18, %s1080_s19  }
  0x11   :  { %s1081_s21 = smov [#allocation3]  }
  0x12   :  { %s25_s22 = sshll.u32 %s1081_s21, 4  ;;  %s26_s22 = int_to_ptr.vmem [resolvable:$true] %s25_s22 }
  0x13   :  { %s1020_s23 = scalar_lea.vmem %s26_s22, 512  ;;  %p1025_p6 = scmp.lt.s32.totalorder %s26_s22, %s26_s22 }
  0x14   :  { %p1021_p5 = scmp.ne.s32.totalorder %s26_s22, %s1020_s23  ;;  %p1026_p7 = scmp.lt.s32.totalorder %s1020_s23, %s1020_s23 }
  0x16   :  { %p1027_p8 = por %p1026_p7, %p1025_p6 }
  0x18   :  { %p1028_p9 = pnand %p1027_p8, %p1021_p5 }
  0x1a   :  { %1031 = shalt.err (!%p1028_p9)
}
  0x1b   :  { %s1082_s24 = smov 128   ;;  %s1083_s25 = smov 8  }
  0x1c   :  { %31 = dma.hbm_to_vmem [thread:$0]  %s1261_s0, 512, %s26_s22, [#allocation4], %s1082_s24, %s1082_s24, %s1083_s25  }
  0x1d   :  { %s1084_s28 = smov [#allocation7]   ;;  %s1085_s30 = smov [#allocation8]  }
  0x1e   :  { %s55_s29 = sshll.u32 %s1084_s28, 4  ;;  %s67_s3 = sshll.u32 %s1085_s30, 4  ;;  %s56_s29 = int_to_ptr.vmem [resolvable:$true] %s55_s29  ;;  %s68_s3 = int_to_ptr.vmem [resolvable:$true] %s67_s3 }
  0x1f   :  { %s1040_s11 = scalar_lea.vmem %s56_s29, 1024  ;;  %p1045_p11 = scmp.lt.s32.totalorder %s56_s29, %s56_s29 }
  0x20   :  { %p1041_p10 = scmp.ne.s32.totalorder %s56_s29, %s1040_s11  ;;  %p1046_p12 = scmp.lt.s32.totalorder %s1040_s11, %s1040_s11 }
  0x22   :  { %p1047_p13 = por %p1046_p12, %p1045_p11 }
  0x24   :  { %p1048_p0 = pnand %p1047_p13, %p1041_p10 }
  0x26   :  { %1051 = shalt.err (!%p1048_p0)
}
  0x27   :  { %61 = dma.hbm_to_vmem [thread:$0]  %s1266_s5, 1024, %s56_s29, [#allocation6], %s1079_s18, %s1079_s18, %s1080_s19  }
  0x28   :  { %s1060_s0 = scalar_lea.vmem %s68_s3, 1024  ;;  %p1065_p2 = scmp.lt.s32.totalorder %s68_s3, %s68_s3 }
  0x29   :  { %p1061_p1 = scmp.ne.s32.totalorder %s68_s3, %s1060_s0  ;;  %p1066_p3 = scmp.lt.s32.totalorder %s1060_s0, %s1060_s0 }
  0x2b   :  { %p1067_p4 = por %p1066_p3, %p1065_p2 }
  0x2d   :  { %p1068_p5 = pnand %p1067_p4, %p1061_p1 }
  0x2f   :  { %1071 = shalt.err (!%p1068_p5)
}
  0x30   :  { %73 = dma.hbm_to_vmem [thread:$0]  %s1267_s6, 1024, %s68_s3, [#allocation9], %s1079_s18, %s1079_s18, %s1080_s19  }
  0x31   :  { %1072 = dma.done.wait [#allocation4], 512  }
  0x32   :  { %1073 = vsyncadd [#allocation4], 4294966784 }
  0x33   :  { %1074 = dma.done.wait [#allocation6], 3072  }
  0x34   :  { %1075 = vsyncadd [#allocation6], 4294964224 }
  0x35   :  { %1076 = dma.done.wait [#allocation9], 1024  }
  0x36   :  { %1077 = vsyncadd [#allocation9], 4294966272  ;;  %v1086_v1 = vmov 0   ;;  %v940_v2 = vld [vmem:[%s1262_s1 + $0x34] ss:$8 sps:$4 sm:$0xff]   ;;  %v93_v12 = vld [vmem:[#allocation3] sm:$0xff]  ;;  %v109_v36 = vlaneseq }
  0x37   :  { %198 = vmatprep.mubr.bf16.mxu0 %v1086_v1  ;;  %v942_v3 = vld [vmem:[%s1262_s1 + $0x30] ss:$8 sps:$4 sm:$0xff]   ;;  %174 = vmatprep.subr.bf16.mxu0 %v940_v2  ;;  %v943_v4 = vld [vmem:[%s1262_s1 + $0x24] ss:$8 sps:$4 sm:$0xff]   ;;  %v945_v5 = vld [vmem:[%s1262_s1 + $0x20] ss:$8 sps:$4 sm:$0xff]  }
  0x38   :  { %175 = vmatpush1.bf16.msra.mxu0 %v942_v3  ;;  %v946_v6 = vld [vmem:[%s1262_s1 + $0x14] ss:$8 sps:$4 sm:$0xff]   ;;  %v948_v7 = vld [vmem:[%s1262_s1 + $0x10] ss:$8 sps:$4 sm:$0xff]   ;;  %v949_v8 = vld [vmem:[%s1262_s1 + $0x4] ss:$8 sps:$4 sm:$0xff]  }
  0x39   :  { %176 = vmatprep.subr.bf16.mxu0 %v943_v4  ;;  %v952_v9 = vld [vmem:[#allocation5 + $0x78] sm:$0xff]   ;;  %v94_v13 = vld [vmem:[#allocation3 + $0x8] sm:$0xff]  ;;  %v954_v14 = vld [vmem:[#allocation5 + $0x70] sm:$0xff]   ;;  %vm159_vm0 = vcmask 523264   ;;  %v1087_v33 = vmov 0.0   ;;  %v110_v37 = vshrl.u32 %v109_v36, 7 }
  0x3a   :  { %v953_v10 = vld [vmem:[#allocation5 + $0x38] sm:$0xff]   ;;  %814 = vmatprep.subr.bf16.mxu1 %v952_v9  ;;  %v955_v15 = vld [vmem:[#allocation5 + $0x30] sm:$0xff]   ;;  %v956_v16 = vld [vmem:[#allocation5 + $0x68] sm:$0xff]   ;;  %v97_v17 = vpack.c.bf16 %v94_v13, %v93_v12  ;;  %vm1088_vm1 = vmmov 0   ;;  %vm751_vm2 = vcmask 7168  }
  0x3b   :  { %v951_v11 = vld [vmem:[%s1262_s1] ss:$8 sps:$4 sm:$0xff]   ;;  %815 = vmatpush3.bf16.msra.mxu1 %v953_v10  ;;  %v95_v21 = vld [vmem:[#allocation3 + $0x10] sm:$0xff]  ;;  %v115_v38 = vsub.s32 1, %v110_v37  ;;  %v111_v39 = vsub.s32 0, %v110_v37 }
  0x3c   :  { %177 = vmatpush1.bf16.msra.mxu0 %v945_v5  ;;  %816 = vmatprep.subr.bf16.mxu1 %v954_v14  ;;  %v957_v18 = vld [vmem:[#allocation5 + $0x28] sm:$0xff]   ;;  %v958_v19 = vld [vmem:[#allocation5 + $0x60] sm:$0xff]   ;;  %v96_v22 = vld [vmem:[#allocation3 + $0x18] sm:$0xff] }
  0x3d   :  { %178 = vmatprep.subr.bf16.mxu0 %v946_v6  ;;  %v959_v20 = vld [vmem:[#allocation5 + $0x20] sm:$0xff]   ;;  %v960_v23 = vld [vmem:[#allocation5 + $0x58] sm:$0xff]   ;;  %v98_v25 = vpack.c.bf16 %v96_v22, %v95_v21  ;;  %v962_v26 = vld [vmem:[#allocation5 + $0x50] sm:$0xff]  }
  0x3e   :  { %v961_v24 = vld [vmem:[#allocation5 + $0x18] sm:$0xff]   ;;  %v963_v27 = vld [vmem:[#allocation5 + $0x10] sm:$0xff]   ;;  %v964_v28 = vld [vmem:[#allocation5 + $0x48] sm:$0xff]  }
  0x3f   :  { %817 = vmatpush3.bf16.msra.mxu1 %v955_v15  ;;  %v965_v29 = vld [vmem:[#allocation5 + $0x8] sm:$0xff]   ;;  %v966_v30 = vld [vmem:[#allocation5 + $0x40] sm:$0xff]   ;;  %v970_v32 = vld [vmem:[#allocation8 + $0x38] sm:$0xff]  }
  0x40   :  { %179 = vmatpush1.bf16.msra.mxu0 %v948_v7  ;;  %818 = vmatprep.subr.bf16.mxu1 %v956_v16  ;;  %v967_v31 = vld [vmem:[#allocation5] sm:$0xff]   ;;  %v972_v34 = vld [vmem:[#allocation8 + $0x30] sm:$0xff]   ;;  %v974_v35 = vld [vmem:[#allocation8 + $0x28] sm:$0xff]  }
  0x41   :  { %180 = vmatprep.subr.bf16.mxu0 %v949_v8  ;;  %v107_v40 = vld [vmem:[%s1263_s2] sm:$0x3]  ;;  %v969_v2 = vld [vmem:[#allocation7 + $0x30] sm:$0xff]   ;;  %v971_v8 = vld [vmem:[#allocation7 + $0x28] sm:$0xff]  }
  0x42   :  { %v116_v42 = vrot.slane %v107_v40, %v115_v38  ;;  %v112_v43 = vrot.slane %v107_v40, %v111_v39  ;;  %v968_v58 = vld [vmem:[#allocation7 + $0x38] sm:$0xff]   ;;  %v973_v10 = vld [vmem:[#allocation7 + $0x20] sm:$0xff]   ;;  %v977_v13 = vld [vmem:[#allocation7 + $0x10] sm:$0xff]  }
  0x43   :  { %819 = vmatpush3.bf16.msra.mxu1 %v957_v18  ;;  %v976_v12 = vld [vmem:[#allocation8 + $0x20] sm:$0xff]   ;;  %v978_v14 = vld [vmem:[#allocation8 + $0x18] sm:$0xff]   ;;  %v979_v15 = vld [vmem:[#allocation7 + $0x8] sm:$0xff]  }
  0x44   :  { %181 = vmatpush1.bf16.msra.mxu0 %v951_v11  ;;  %820 = vmatprep.subr.bf16.mxu1 %v958_v19  ;;  %v975_v11 = vld [vmem:[#allocation7 + $0x18] sm:$0xff]   ;;  %v980_v16 = vld [vmem:[#allocation8 + $0x10] sm:$0xff]   ;;  %v982_v18 = vld [vmem:[#allocation8 + $0x8] sm:$0xff]  }
  0x45   :  { %869 = vmatprep.subr.bf16.mxu0 %v1087_v33  ;;  %v983_v19 = vld [vmem:[#allocation8] sm:$0xff]   ;;  %v984_v39 = vld [vmem:[%s1269_s8 + $0x38] sm:$0xff]  }
  0x47   :  { %769 = vmatmul.mubr.msk.bf16.vlgmr.msra.gmra.mxu0 %vm159_vm0, %v97_v17  ;;  %821 = vmatpush3.bf16.msra.mxu1 %v959_v20  ;;  %v981_v17 = vld [vmem:[#allocation7] sm:$0xff]  }
  0x48   :  { %208 = vmatprep.mubr.bf16.mxu0 %v1086_v1  ;;  %822 = vmatprep.subr.bf16.mxu1 %v960_v23 }
  0x49   :  { %870 = vmatpush3.bf16.msra.mxu0 %v970_v32 }
  0x4a   :  { %871 = vmatprep.subr.bf16.mxu0 %v1087_v33 }
  0x4b   :  { %823 = vmatpush3.bf16.msra.mxu1 %v961_v24  ;;  %v771_v24 = vld [vmem:[%s1265_s4] ss:$0 sm:$0xff] }
  0x4c   :  { %824 = vmatprep.subr.bf16.mxu1 %v962_v26 }
  0x4d   :  { %872 = vmatpush3.bf16.msra.mxu0 %v972_v34 }
  0x4e   :  { %873 = vmatprep.subr.bf16.mxu0 %v1087_v33 }
  0x4f   :  { %770 = vmatmul.mubr.msk.bf16.gmra.mxu0 %vm159_vm0, %v98_v25  ;;  %825 = vmatpush3.bf16.msra.mxu1 %v963_v27 }
  0x50   :  { %826 = vmatprep.subr.bf16.mxu1 %v964_v28  ;;  %885 = vmatprep.mubr.msk.bf16.mxu0 %vm1088_vm1, %v1087_v33 }
  0x51   :  { %874 = vmatpush3.bf16.msra.mxu0 %v974_v35 }
  0x52   :  { %875 = vmatprep.subr.bf16.mxu0 %v1087_v33 }
  0x53   :  { %827 = vmatpush3.bf16.msra.mxu1 %v965_v29 }
  0x54   :  { %828 = vmatprep.subr.bf16.mxu1 %v966_v30 }
  0x55   :  { %876 = vmatpush3.bf16.msra.mxu0 %v976_v12 }
  0x56   :  { %877 = vmatprep.subr.bf16.mxu0 %v1087_v33 }
  0x57   :  { %829 = vmatpush3.bf16.msra.mxu1 %v967_v31 }
  0x58   :  { %889 = vmatprep.subr.bf16.mxu1 %v1087_v33 }
  0x59   :  { %878 = vmatpush3.bf16.msra.mxu0 %v978_v14 }
  0x5a   :  { %879 = vmatprep.subr.bf16.mxu0 %v1087_v33 }
  0x5d   :  { %880 = vmatpush3.bf16.msra.mxu0 %v980_v16 }
  0x5e   :  { %881 = vmatprep.subr.bf16.mxu0 %v1087_v33 }
  0x61   :  { %882 = vmatpush3.bf16.msra.mxu0 %v982_v18 }
  0x62   :  { %883 = vmatprep.subr.bf16.mxu0 %v1087_v33 }
  0x65   :  { %884 = vmatpush3.bf16.msra.mxu0 %v983_v19 }
  0x66   :  { %909 = vmatprep.subr.bf16.mxu0 %v1087_v33 }
 0x107   :  { %v200_v41 = vpop.f32.mrf.mxu0 }
 0x108   :  { %v201_v48 = vadd.f32 %v200_v41, %v112_v43  ;;  %v985_v41 = vld [vmem:[%s1269_s8 + $0x30] sm:$0xff]  }
 0x109   :  { %v202_v44 = vpop.f32.mrf.mxu0 }
 0x10a   :  { %v203_v46 = vadd.f32 %v202_v44, %v116_v42  ;;  %v219_v55 = vmax.f32 %v201_v48, 0.0  ;;  %v988_v44 = vld [vmem:[%s1269_s8 + $0x18] sm:$0xff]  }
 0x10b   :  { %v204_v45 = vpop.f32.mrf.mxu0 }
 0x10c   :  { %v205_v47 = vadd.f32 %v204_v45, %v112_v43  ;;  %v220_v53 = vmax.f32 %v203_v46, 0.0  ;;  %v989_v45 = vld [vmem:[%s1269_s8 + $0x10] sm:$0xff]   ;;  %v990_v46 = vld [vmem:[%s1269_s8 + $0x8] sm:$0xff]  }
 0x10d   :  { %v206_v49 = vpop.f32.mrf.mxu0 }
 0x10e   :  { %v207_v50 = vadd.f32 %v206_v49, %v116_v42  ;;  %v221_v51 = vmax.f32 %v205_v47, 0.0  ;;  %v991_v47 = vld [vmem:[%s1269_s8] sm:$0xff]  }
 0x10f   :  { %v210_v52 = vpop.f32.mrf.mxu0 }
 0x110   :  { %v222_v54 = vmax.f32 %v207_v50, 0.0  ;;  %v227_v59 = vpack.c.bf16 %v221_v51, %v219_v55  ;;  %v211_v63 = vadd.f32 %v210_v52, %v112_v43 }
 0x111   :  { %v212_v56 = vpop.f32.mrf.mxu0 }
 0x112   :  { %v228_v57 = vpack.c.bf16 %v222_v54, %v220_v53  ;;  %v213_v61 = vadd.f32 %v212_v56, %v116_v42  ;;  %v223_v6 = vmax.f32 %v211_v63, 0.0  ;;  %v804_v54 = vld [vmem:[%s1268_s7] ss:$0 sm:$0xff] }
 0x113   :  { %v214_v60 = vpop.f32.mrf.mxu0  ;;  %v805_v63 = vld [vmem:[#allocation2] ss:$0 sm:$0xff] }
 0x114   :  { %v215_v62 = vadd.f32 %v214_v60, %v112_v43  ;;  %398 = vmatprep.mubr.bf16.mxu1 %v228_v57  ;;  %v224_v4 = vmax.f32 %v213_v61, 0.0  ;;  %v987_v43 = vld [vmem:[%s1269_s8 + $0x20] sm:$0xff]  }
 0x115   :  { %v216_v0 = vpop.f32.mrf.mxu0  ;;  %399 = vmatmul.mubr.bf16.vlgmr.msra.gmra.mxu1 %v227_v59 }
 0x116   :  { %v217_v1 = vadd.f32 %v216_v0, %v116_v42  ;;  %890 = vmatpush3.bf16.msra.mxu1 %v968_v58  ;;  %v225_v3 = vmax.f32 %v215_v62, 0.0  ;;  %v986_v42 = vld [vmem:[%s1269_s8 + $0x28] sm:$0xff]  }
 0x117   :  { %891 = vmatprep.subr.bf16.mxu1 %v1087_v33 }
 0x118   :  { %v226_v5 = vmax.f32 %v217_v1, 0.0  ;;  %v229_v9 = vpack.c.bf16 %v225_v3, %v223_v6 }
 0x11a   :  { %v230_v7 = vpack.c.bf16 %v226_v5, %v224_v4  ;;  %892 = vmatpush3.bf16.msra.mxu1 %v969_v2 }
 0x11b   :  { %893 = vmatprep.subr.bf16.mxu1 %v1087_v33 }
 0x11c   :  { %406 = vmatprep.mubr.bf16.mxu1 %v230_v7 }
 0x11d   :  { %407 = vmatmul.mubr.bf16.gmra.mxu1 %v229_v9 }
 0x11e   :  { %894 = vmatpush3.bf16.msra.mxu1 %v971_v8  ;;  %905 = vmatprep.mubr.msk.bf16.mxu1 %vm1088_vm1, %v1087_v33 }
 0x11f   :  { %895 = vmatprep.subr.bf16.mxu1 %v1087_v33 }
 0x122   :  { %896 = vmatpush3.bf16.msra.mxu1 %v973_v10 }
 0x123   :  { %897 = vmatprep.subr.bf16.mxu1 %v1087_v33 }
 0x126   :  { %898 = vmatpush3.bf16.msra.mxu1 %v975_v11 }
 0x127   :  { %899 = vmatprep.subr.bf16.mxu1 %v1087_v33 }
 0x12a   :  { %900 = vmatpush3.bf16.msra.mxu1 %v977_v13 }
 0x12b   :  { %901 = vmatprep.subr.bf16.mxu1 %v1087_v33 }
 0x12e   :  { %902 = vmatpush3.bf16.msra.mxu1 %v979_v15 }
 0x12f   :  { %903 = vmatprep.subr.bf16.mxu1 %v1087_v33 }
 0x132   :  { %904 = vmatpush3.bf16.msra.mxu1 %v981_v17 }
 0x1d5   :  { %v830_v20 = vpop.f32.mrf.mxu1 }
 0x1d7   :  { %v831_v21 = vpop.f32.mrf.mxu1 }
 0x1d8   :  { %v832_v23 = vadd.f32 %v831_v21, %v830_v20 }
 0x1d9   :  { %v833_v22 = vpop.f32.mrf.mxu1 }
 0x1da   :  { %v401_v28 = vadd.f32 %v832_v23, %v771_v24 }
 0x1db   :  { %v834_v25 = vpop.f32.mrf.mxu1 }
 0x1dc   :  { %v835_v26 = vadd.f32 %v834_v25, %v833_v22 }
 0x1dd   :  { %v836_v27 = vpop.f32.mrf.mxu1 }
 0x1de   :  { %v404_v29 = vadd.f32 %v835_v26, %v771_v24 }
 0x1df   :  { %v837_v30 = vpop.f32.mrf.mxu1 }
 0x1e0   :  { %v415_v31 = vpack.c.bf16 %v404_v29, %v401_v28  ;;  %v838_v34 = vadd.f32 %v837_v30, %v836_v27 }
 0x1e1   :  { %v839_v32 = vpop.f32.mrf.mxu1 }
 0x1e2   :  { %906 = vmatmul.mubr.bf16.vlgmr.msra.gmra.mxu1 %v415_v31  ;;  %v409_v37 = vadd.f32 %v838_v34, %v771_v24 }
 0x1e3   :  { %v840_v35 = vpop.f32.mrf.mxu1 }
 0x1e4   :  { %v841_v36 = vadd.f32 %v840_v35, %v839_v32 }
 0x1e6   :  { %v412_v38 = vadd.f32 %v841_v36, %v771_v24 }
 0x1e8   :  { %v416_v40 = vpack.c.bf16 %v412_v38, %v409_v37 }
 0x1ea   :  { %886 = vmatmul.mubr.bf16.vlgmr.msra.gmra.mxu0 %v416_v40 }
 0x1eb   :  { %910 = vmatpush3.bf16.msra.mxu0 %v984_v39  ;;  %925 = vmatprep.mubr.msk.bf16.mxu0 %vm1088_vm1, %v1087_v33 }
 0x1ec   :  { %911 = vmatprep.subr.bf16.mxu0 %v1087_v33 }
 0x1ef   :  { %912 = vmatpush3.bf16.msra.mxu0 %v985_v41 }
 0x1f0   :  { %913 = vmatprep.subr.bf16.mxu0 %v1087_v33 }
 0x1f3   :  { %914 = vmatpush3.bf16.msra.mxu0 %v986_v42 }
 0x1f4   :  { %915 = vmatprep.subr.bf16.mxu0 %v1087_v33 }
 0x1f7   :  { %916 = vmatpush3.bf16.msra.mxu0 %v987_v43 }
 0x1f8   :  { %917 = vmatprep.subr.bf16.mxu0 %v1087_v33 }
 0x1fb   :  { %918 = vmatpush3.bf16.msra.mxu0 %v988_v44 }
 0x1fc   :  { %919 = vmatprep.subr.bf16.mxu0 %v1087_v33 }
 0x1ff   :  { %920 = vmatpush3.bf16.msra.mxu0 %v989_v45 }
 0x200   :  { %921 = vmatprep.subr.bf16.mxu0 %v1087_v33 }
 0x203   :  { %922 = vmatpush3.bf16.msra.mxu0 %v990_v46 }
 0x204   :  { %923 = vmatprep.subr.bf16.mxu0 %v1087_v33 }
 0x207   :  { %924 = vmatpush3.bf16.msra.mxu0 %v991_v47 }
 0x2a2   :  { %v620_v48 = vpop.f32.mrf.mxu1 }
 0x2a4   :  { %v907_v49 = vpop.f32.mrf.mxu1 }
 0x2a6   :  { %v623_v50 = vpop.f32.mrf.mxu1 }
 0x2a8   :  { %v908_v51 = vpop.f32.mrf.mxu1 }
 0x2aa   :  { %v531_v52 = vpop.f32.mrf.mxu0 }
 0x2ab   :  { %v621_v53 = vadd.f32 %v620_v48, %v531_v52 }
 0x2ac   :  { %v887_v55 = vpop.f32.mrf.mxu0 }
 0x2ad   :  { %v634_v57 = vadd.f32 %v804_v54, %v621_v53 }
 0x2ae   :  { %v534_v56 = vpop.f32.mrf.mxu0 }
 0x2af   :  { %v624_v58 = vadd.f32 %v623_v50, %v534_v56  ;;  %v636_v60 = vmax.f32 %v634_v57, 0.0 }
 0x2b0   :  { %v888_v33 = vpop.f32.mrf.mxu0 }
 0x2b1   :  { %v635_v59 = vadd.f32 %v804_v54, %v624_v58 }
 0x2b3   :  { %v637_v61 = vmax.f32 %v635_v59, 0.0 }
 0x2b5   :  { %v638_v62 = vpack.c.bf16 %v637_v61, %v636_v60 }
 0x2b7   :  { %926 = vmatmul.mubr.bf16.vlgmr.msra.gmra.mxu0 %v638_v62 }
 0x377   :  { %v744_v0 = vpop.f32.mrf.mxu0 }
 0x378   :  { %v745_v1 = vadd.f32 %v805_v63, %v744_v0 }
 0x379   :  { %v927_v2 = vpop.f32.mrf.mxu0 }
 0x37a   :  { %752 = vst.msk [vmem:[%s1271_s10] sm:$0xff] %vm751_vm2, %v745_v1 }
 0x37b   :  { %v747_v3 = vpop.f32.mrf.mxu0 }
 0x37c   :  { %v748_v4 = vadd.f32 %v805_v63, %v747_v3 }
 0x37d   :  { %v928_v5 = vpop.f32.mrf.mxu0 }
 0x37e   :  { %753 = vst.msk [vmem:[%s1271_s10 + $0x8] sm:$0xff] %vm751_vm2, %v748_v4 }
 0x37f   :  { %758 = vsyncpa [#allocation4], 1 }
 0x380   :  { %759 = vsyncpa [#allocation6], 1 }
 0x381   :  { %760 = vsyncpa [#allocation9], 1 }

</bundles_post_ra>
